<compile_context>
chip_gen: v7x
topology: tpu7x:2x2x1
jax: 0.10.0
libtpu: 0.0.40
codegen_flags: <defaults>
</compile_context>

<pallas_src>
import functools

import jax
import jax.numpy as jnp
from jax.experimental import pallas as pl
from jax.experimental.pallas import tpu as pltpu

EPS = 1e-5
_LANE = 128
_SUBLANE = 8
_VMEM_CAP_BYTES = 48 << 20       # v7x-safe ceiling (64 MiB physical per TC)
_BLOCK_BUDGET_BYTES = 16 << 20   # target double-buffered x+out DMA footprint per step


def _span_kernel(x_ref, style_ref, w_ref, b_ref, o_ref, *, hw_true, tc):
    # x_ref:     (TC,  HWp)  one channel-tile of one batch element
    # style_ref: (S,   HWp)  style map of the same batch element
    # w_ref:     (2*TC, S)   packed 1x1-conv weights: rows [0:TC]=scale, [TC:]=shift
    # b_ref:     (2*TC, 1)   packed biases (same row order)
    # o_ref:     (TC,  HWp)
    x = x_ref[...].astype(jnp.float32)

    # Instance-norm stats: two independent cross-lane reductions (overlap on the
    # XLU), biased variance like PyTorch InstanceNorm2d, clamped against
    # cancellation. Division uses the *true* HW (padded lanes are zero).
    inv_hw = jnp.float32(1.0 / hw_true)
    s1 = jnp.sum(x, axis=-1, keepdims=True)
    s2 = jnp.sum(x * x, axis=-1, keepdims=True)
    mean = s1 * inv_hw
    var = jnp.maximum(s2 * inv_hw - mean * mean, 0.0)
    x_norm = (x - mean) * jax.lax.rsqrt(var + EPS)

    # Fused 1x1 convs: a single skinny MXU matmul yields both scale and shift.
    style = style_ref[...].astype(jnp.float32)
    affine = jnp.dot(w_ref[...].astype(jnp.float32), style,
                     preferred_element_type=jnp.float32)
    affine = affine + b_ref[...].astype(jnp.float32)
    scale = affine[:tc, :]
    shift = affine[tc:, :]

    o_ref[...] = (x_norm * scale + shift).astype(o_ref.dtype)


def _pick_channel_tile(C, HW_pad, x_itemsize, out_itemsize):
    """Largest multiple-of-8 divisor of C (<= 256) whose double-buffered x+out
    blocks fit the per-step budget; fall back to full C when no such divisor."""
    def step_bytes(tc):
        return 2 * tc * HW_pad * (x_itemsize + out_itemsize)

    divisors = [t for t in range(_SUBLANE, min(C, 256) + 1, _SUBLANE) if C % t == 0]
    fitting = [t for t in divisors if step_bytes(t) <= _BLOCK_BUDGET_BYTES]
    if fitting:
        return max(fitting)
    if divisors:
        return min(divisors)   # even the smallest aligned tile blows the budget
    return C                   # no multiple-of-8 divisor (e.g. C < 8): use full C


def span_layer(x, style, w_scale, b_scale, w_shift, b_shift, *, channel_tile=None):
    """x: (N, C, H, W); style: (N, S, H, W); w_*: (C, S); b_*: (C,)."""
    N, C, H, W = x.shape
    S = style.shape[1]
    HW = H * W
    HW_pad = ((HW + _LANE - 1) // _LANE) * _LANE
    out_dtype = x.dtype

    # Keep x/style in their native dtype on the wire (no wrapper f32 upcast);
    # pad the lane dim only when HW is not already a multiple of 128.
    x2 = x.reshape(N, C, HW)
    s2 = style.reshape(N, S, HW)
    if HW_pad != HW:
        x2 = jnp.pad(x2, ((0, 0), (0, 0), (0, HW_pad - HW)))
        s2 = jnp.pad(s2, ((0, 0), (0, 0), (0, HW_pad - HW)))

    if channel_tile is None:
        TC = _pick_channel_tile(C, HW_pad, x2.dtype.itemsize,
                                jnp.dtype(out_dtype).itemsize)
    else:
        TC = channel_tile
    assert C % TC == 0, f"channel_tile {TC} must divide C={C}"
    num_c = C // TC

    # Pack [scale; shift] weights per channel tile so each grid step does one
    # (2*TC, S) @ (S, HW) matmul instead of two.
    w_cat = jnp.concatenate(
        [w_scale.reshape(num_c, TC, S), w_shift.reshape(num_c, TC, S)], axis=1
    ).reshape(2 * C, S).astype(jnp.float32)
    b_cat = jnp.concatenate(
        [b_scale.reshape(num_c, TC, 1), b_shift.reshape(num_c, TC, 1)], axis=1
    ).reshape(2 * C, 1).astype(jnp.float32)

    # Per-step VMEM: double-buffered x/style/out blocks + weights + f32 temps.
    x_bytes = TC * HW_pad * x2.dtype.itemsize
    style_bytes = S * HW_pad * s2.dtype.itemsize
    out_bytes = TC * HW_pad * jnp.dtype(out_dtype).itemsize
    w_bytes = 2 * TC * (S + 1) * 4
    dma_bytes = 2 * (x_bytes + style_bytes + out_bytes + w_bytes)
    tmp_bytes = 6 * TC * HW_pad * 4 + 2 * S * HW_pad * 4
    vmem_limit = int(min(max(dma_bytes + tmp_bytes + (2 << 20), 16 << 20),
                         _VMEM_CAP_BYTES))
    # TODO(synk): for extreme spatial sizes where even a TC=8 tile overflows the
    # VMEM cap, an extra "arbitrary" HW grid axis with scratch sum/sumsq
    # accumulation would be required (costs ~1.5-2x HBM reads of x).

    flops = N * (2 * (2 * C) * S * HW_pad + 8 * C * HW_pad)
    bytes_accessed = (x2.size * x2.dtype.itemsize
                      + s2.size * s2.dtype.itemsize
                      + N * C * HW_pad * jnp.dtype(out_dtype).itemsize
                      + w_cat.size * 4 + b_cat.size * 4)

    kernel = functools.partial(_span_kernel, hw_true=HW, tc=TC)

    out = pl.pallas_call(
        kernel,
        out_shape=jax.ShapeDtypeStruct((N, C, HW_pad), out_dtype),
        grid_spec=pltpu.PrefetchScalarGridSpec(
            num_scalar_prefetch=0,
            grid=(N, num_c),
            in_specs=[
                pl.BlockSpec((None, TC, HW_pad), lambda n, c: (n, c, 0)),  # x tile
                pl.BlockSpec((None, S, HW_pad), lambda n, c: (n, 0, 0)),   # style (reused across c)
                pl.BlockSpec((2 * TC, S), lambda n, c: (c, 0)),            # packed weights
                pl.BlockSpec((2 * TC, 1), lambda n, c: (c, 0)),            # packed biases
            ],
            out_specs=pl.BlockSpec((None, TC, HW_pad), lambda n, c: (n, c, 0)),
        ),
        compiler_params=pltpu.CompilerParams(
            dimension_semantics=("parallel", "parallel"),
            vmem_limit_bytes=vmem_limit,
        ),
        cost_estimate=pl.CostEstimate(
            flops=flops, transcendentals=N * C, bytes_accessed=bytes_accessed),
    )(x2, s2, w_cat, b_cat)

    if HW_pad != HW:
        out = out[:, :, :HW]
    return out.reshape(N, C, H, W)


def span_layer_ref(x, style, w_scale, b_scale, w_shift, b_shift):
    """Pure-JAX reference for correctness checking."""
    x = x.astype(jnp.float32)
    style = style.astype(jnp.float32)
    mean = jnp.mean(x, axis=(2, 3), keepdims=True)
    var = jnp.mean((x - mean) ** 2, axis=(2, 3), keepdims=True)
    x_norm = (x - mean) * jax.lax.rsqrt(var + EPS)
    scale = jnp.einsum('cs,nshw->nchw', w_scale.astype(jnp.float32), style) \
        + b_scale.astype(jnp.float32)[None, :, None, None]
    shift = jnp.einsum('cs,nshw->nchw', w_shift.astype(jnp.float32), style) \
        + b_shift.astype(jnp.float32)[None, :, None, None]
    return x_norm * scale + shift


if __name__ == "__main__":
    key = jax.random.PRNGKey(0)

    def make_case(k, N, C, H, W, S):
        ks = jax.random.split(k, 6)
        x = jax.random.normal(ks[0], (N, C, H, W), dtype=jnp.float32)
        style = jax.random.normal(ks[1], (N, S, H, W), dtype=jnp.float32)
        w_scale = jax.random.normal(ks[2], (C, S), dtype=jnp.float32) * 0.1
        b_scale = jax.random.normal(ks[3], (C,), dtype=jnp.float32) * 0.1
        w_shift = jax.random.normal(ks[4], (C, S), dtype=jnp.float32) * 0.1
        b_shift = jax.random.normal(ks[5], (C,), dtype=jnp.float32) * 0.1
        return x, style, w_scale, b_scale, w_shift, b_shift

    k1, k2, k3 = jax.random.split(key, 3)

    # Case 1: small shapes, single channel tile, lane-aligned HW (16*16 = 256).
    args = make_case(k1, N=2, C=8, H=16, W=16, S=8)
    out = jax.block_until_ready(span_layer(*args))
    ref = span_layer_ref(*args)
    assert out.shape == ref.shape
    assert jnp.allclose(out, ref, atol=1e-4, rtol=1e-4), "case 1 mismatch vs reference"

    # Case 2: explicit channel tiling (grid has a C axis with >1 step).
    args = make_case(k2, N=2, C=16, H=16, W=16, S=8)
    out = jax.block_until_ready(span_layer(*args, channel_tile=8))
    ref = span_layer_ref(*args)
    assert jnp.allclose(out, ref, atol=1e-4, rtol=1e-4), "case 2 mismatch vs reference"

    # Case 3: HW not a multiple of 128 (exercises lane padding + unpad).
    args = make_case(k3, N=2, C=8, H=10, W=10, S=8)
    out = jax.block_until_ready(span_layer(*args))
    ref = span_layer_ref(*args)
    assert jnp.allclose(out, ref, atol=1e-4, rtol=1e-4), "case 3 mismatch vs reference"

    print("KERNEL_OK")
</pallas_src>

<mosaic_0001>
module attributes {stable_mosaic.version = 11 : i64} {
  func.func @_span_kernel(%arg0: i32, %arg1: i32, %arg2: memref<1x8x256xf32, #tpu.memory_space<vmem>>, %arg3: memref<1x8x256xf32, #tpu.memory_space<vmem>>, %arg4: memref<16x8xf32, #tpu.memory_space<vmem>>, %arg5: memref<16x1xf32, #tpu.memory_space<vmem>>, %arg6: memref<1x8x256xf32, #tpu.memory_space<vmem>>) attributes {dimension_semantics = [#tpu.dimension_semantics<parallel>, #tpu.dimension_semantics<parallel>], iteration_bounds = array<i64: 2, 1>, scalar_prefetch = 0 : i64, scratch_operands = 0 : i64, tpu.core_type = #tpu.core_type<tc>, window_params = [{transform_indices = @transform_0, window_bounds = array<i64: 1, 8, 256>}, {transform_indices = @transform_1, window_bounds = array<i64: 1, 8, 256>}, {transform_indices = @transform_2, window_bounds = array<i64: 16, 8>}, {transform_indices = @transform_3, window_bounds = array<i64: 16, 1>}, {transform_indices = @transform_4, window_bounds = array<i64: 1, 8, 256>}]} {
    %c0 = arith.constant 0 : index
    %c0_0 = arith.constant 0 : index
    %c0_1 = arith.constant 0 : index
    %0 = vector.load %arg2[%c0, %c0_0, %c0_1] : memref<1x8x256xf32, #tpu.memory_space<vmem>>, vector<1x8x256xf32>
    %1 = vector.shape_cast %0 : vector<1x8x256xf32> to vector<8x256xf32>
    %cst = arith.constant dense<0.000000e+00> : vector<8xf32>
    %2 = vector.multi_reduction <add>, %1, %cst [1] : vector<8x256xf32> to vector<8xf32>
    %3 = vector.shape_cast %2 : vector<8xf32> to vector<8x1xf32>
    %4 = arith.mulf %1, %1 : vector<8x256xf32>
    %cst_2 = arith.constant dense<0.000000e+00> : vector<8xf32>
    %5 = vector.multi_reduction <add>, %4, %cst_2 [1] : vector<8x256xf32> to vector<8xf32>
    %6 = vector.shape_cast %5 : vector<8xf32> to vector<8x1xf32>
    %cst_3 = arith.constant 3.906250e-03 : f32
    %7 = vector.broadcast %cst_3 : f32 to vector<8x1xf32>
    %8 = arith.mulf %3, %7 : vector<8x1xf32>
    %cst_4 = arith.constant 3.906250e-03 : f32
    %9 = vector.broadcast %cst_4 : f32 to vector<8x1xf32>
    %10 = arith.mulf %6, %9 : vector<8x1xf32>
    %11 = arith.mulf %8, %8 : vector<8x1xf32>
    %12 = arith.subf %10, %11 : vector<8x1xf32>
    %cst_5 = arith.constant 0.000000e+00 : f32
    %13 = vector.broadcast %cst_5 : f32 to vector<8x1xf32>
    %14 = arith.maximumf %12, %13 : vector<8x1xf32>
    %15 = vector.broadcast %8 : vector<8x1xf32> to vector<8x256xf32>
    %16 = arith.subf %1, %15 : vector<8x256xf32>
    %cst_6 = arith.constant 9.99999974E-6 : f32
    %17 = vector.broadcast %cst_6 : f32 to vector<8x1xf32>
    %18 = arith.addf %14, %17 : vector<8x1xf32>
    %19 = math.rsqrt %18 : vector<8x1xf32>
    %20 = vector.broadcast %19 : vector<8x1xf32> to vector<8x256xf32>
    %21 = arith.mulf %16, %20 : vector<8x256xf32>
    %c0_7 = arith.constant 0 : index
    %c0_8 = arith.constant 0 : index
    %c0_9 = arith.constant 0 : index
    %22 = vector.load %arg3[%c0_7, %c0_8, %c0_9] : memref<1x8x256xf32, #tpu.memory_space<vmem>>, vector<1x8x256xf32>
    %23 = vector.shape_cast %22 : vector<1x8x256xf32> to vector<8x256xf32>
    %c0_10 = arith.constant 0 : index
    %c0_11 = arith.constant 0 : index
    %24 = vector.load %arg4[%c0_10, %c0_11] : memref<16x8xf32, #tpu.memory_space<vmem>>, vector<16x8xf32>
    %cst_12 = arith.constant dense<0.000000e+00> : vector<16x256xf32>
    %25 = tpu.matmul %24, %23, %cst_12 {dimension_numbers = #tpu.dot_dimension_numbers<[1], [0], [0], [1], [0, 0, 1, 1], [], []>} : vector<16x8xf32>, vector<8x256xf32>, vector<16x256xf32> -> vector<16x256xf32>
    %c0_13 = arith.constant 0 : index
    %c0_14 = arith.constant 0 : index
    %26 = vector.load %arg5[%c0_13, %c0_14] : memref<16x1xf32, #tpu.memory_space<vmem>>, vector<16x1xf32>
    %27 = vector.broadcast %26 : vector<16x1xf32> to vector<16x256xf32>
    %28 = arith.addf %25, %27 : vector<16x256xf32>
    %29 = vector.extract_strided_slice %28 {offsets = [0, 0], sizes = [8, 256], strides = [1, 1]} : vector<16x256xf32> to vector<8x256xf32>
    %30 = vector.extract_strided_slice %28 {offsets = [8, 0], sizes = [8, 256], strides = [1, 1]} : vector<16x256xf32> to vector<8x256xf32>
    %31 = arith.mulf %21, %29 : vector<8x256xf32>
    %32 = arith.addf %31, %30 : vector<8x256xf32>
    %c0_15 = arith.constant 0 : index
    %c0_16 = arith.constant 0 : index
    %c0_17 = arith.constant 0 : index
    %33 = vector.load %arg6[%c0_15, %c0_16, %c0_17] : memref<1x8x256xf32, #tpu.memory_space<vmem>>, vector<1x8x256xf32>
    %34 = vector.shape_cast %33 : vector<1x8x256xf32> to vector<8x256xf32>
    %35 = vector.shape_cast %32 : vector<8x256xf32> to vector<1x8x256xf32>
    tpu.vector_store %arg6[%c0_15, %c0_16, %c0_17], %35 {strides = array<i32>} : memref<1x8x256xf32, #tpu.memory_space<vmem>>, vector<1x8x256xf32>,
    return
  }
  func.func @transform_0(%arg0: i32, %arg1: i32) -> (i32, i32, i32) {
    %c0_i32 = arith.constant 0 : i32
    %c0_i32_0 = arith.constant 0 : i32
    return %arg0, %arg1, %c0_i32 : i32, i32, i32
  }
  func.func @transform_1(%arg0: i32, %arg1: i32) -> (i32, i32, i32) {
    %c0_i32 = arith.constant 0 : i32
    %c0_i32_0 = arith.constant 0 : i32
    %c0_i32_1 = arith.constant 0 : i32
    return %arg0, %c0_i32, %c0_i32_0 : i32, i32, i32
  }
  func.func @transform_2(%arg0: i32, %arg1: i32) -> (i32, i32) {
    %c0_i32 = arith.constant 0 : i32
    %c0_i32_0 = arith.constant 0 : i32
    return %arg1, %c0_i32 : i32, i32
  }
  func.func @transform_3(%arg0: i32, %arg1: i32) -> (i32, i32) {
    %c0_i32 = arith.constant 0 : i32
    %c0_i32_0 = arith.constant 0 : i32
    return %arg1, %c0_i32 : i32, i32
  }
  func.func @transform_4(%arg0: i32, %arg1: i32) -> (i32, i32, i32) {
    %c0_i32 = arith.constant 0 : i32
    %c0_i32_0 = arith.constant 0 : i32
    return %arg0, %arg1, %c0_i32 : i32, i32, i32
  }
}

</mosaic_0001>

<bundles_post_ra>
// kernel: tpu_custom_call.1
= control target key start
LH: loop header
LB: loop body
LE: loop exit
PB: predicated region body
PF: predicated region fallthrough
CT: control target
= control target key end

     0   :  { %9 = vsyncpa [#allocation3], 0  ;;  %s1012_s0 = inlined_call_operand.vmem [shape: f32[2,8,256], index: 0, kind: input, shape index: {}]   ;;  %s1013_s1 = inlined_call_operand.hbm [shape: f32[2,8,256], index: 1, kind: input, shape index: {}]   ;;  %s1014_s2 = inlined_call_operand.vmem [shape: f32[16,8], index: 2, kind: input, shape index: {}]   ;;  %s1015_s3 = inlined_call_operand.vmem [shape: f32[16,1], index: 3, kind: input, shape index: {}]   ;;  %s1016_s4 = inlined_call_operand.hbm [shape: f32[2,8,256], index: 4, kind: output, shape index: {}]  }
   0x1   :  { %11 = vsyncpa [#allocation3 + $0x1], 0 }
   0x2   :  { %12 = vsyncpa [#allocation4], 0 }
   0x3   :  { %14 = vsyncpa [#allocation4 + $0x1], 0  ;;  %s819_s15 = smov 0   ;;  %s821_s16 = smov 0  }
   0x4   :  { %s823_s17 = smov 0   ;;  %s825_s18 = smov 0  }
   0x5   :  { %s827_s19 = smov 0   ;;  %s829_s20 = smov 0  }
   0x6 LB: > { %s582_s21 = sadd.s32 4294967295, %s788_s20   ;;  %s583_s22 = sadd.s32 4294967294, %s788_s20   ;;  %s788_s20 = sphi %s829_s20, %s20_s20   ;;  %s784_s19 = sphi %s827_s19, %s1032_s19   ;;  %s780_s18 = sphi %s825_s18, %s1031_s18   ;;  %s776_s17 = sphi %s823_s17, %s1030_s17   ;;  %s772_s16 = sphi %s821_s16, %s1029_s16   ;;  %s768_s15 = sphi %s819_s15, %s1028_s15  }
   0x7   : > { %s32_s23 = sadd.s32 1, %s784_s19  ;;  %s67_s24 = sadd.s32 1, %s776_s17 }
   0x8   : > { %p34_p0 = scmp.ge.s32.totalorder %s32_s23, 2  ;;  %p74_p1 = scmp.ne.s32.totalorder %s776_s17, %s772_s16 }
   0x9   : > { %p75_p2 = scmp.eq.s32.totalorder %s788_s20, 0  ;;  %p80_p3 = scmp.ne.s32.totalorder %s772_s16, %s768_s15 }
   0xa   : > { %s1034_s23 = smov (%p34_p0, %s32_s23), 0  ;;  %p81_p5 = scmp.eq.s32.totalorder %s582_s21, 0 }
   0xb   : > { %p860_p4 = por %p75_p2, %p74_p1  ;;  %s64_s26 = ssub.s32 %s784_s19, %s1034_s23 }
   0xc   : > { %p158_p6 = scmp.eq.s32.totalorder %s582_s21, 1  ;;  %p65_p7 = scmp.eq.s32.totalorder %s64_s26, 0 }
   0xd   : > { %p866_p8 = por %p81_p5, %p80_p3  ;;  %p164_p10 = scmp.eq.s32.totalorder %s583_s22, 1 }
   0xe   : > { %p870_p9 = por %p158_p6, %p74_p1  ;;  %p620_p13 = scmp.lt.s32.totalorder %s788_s20, 2 }
   0xf   : > { %s875_s29 = scalar_select %p65_p7, %s776_s17, %s67_s24  }
  0x10   : > { %s1020_s28 = scalar_select %p870_p9, 1, 0 }
  0x11   : > { %p877_p11 = por %p164_p10, %p80_p3  ;;  %s214_s5 = sand.u32 1, %s776_s17  }
  0x12   : > { %s588_s6 = sshll.u32 %s214_s5, 4  ;;  %s603_s7 = sshll.u32 %s784_s19, 8 }
  0x13   : > { %s1021_s30 = scalar_select %p877_p11, 1, 0 }
  0x14   : > { %s888_s10 = scalar_lea.hbm %s1013_s1, %s603_s7  ;;  %s218_s11 = scalar_lea.vmem [#allocation2], %s588_s6 }
  0x15   : > { %s226_s12 = sshll.u32 %s218_s11, 4  ;;  %p894_p0 = pnand %p620_p13, %p860_p4  ;;  %s890_s12 = int_to_ptr.vmem [resolvable:$true] %s226_s12 }
  0x16   : > { %s215_s14 = scalar_lea.sflag [#allocation3], %s214_s5  ;;  %s676_s21 = scalar_lea.hbm %s888_s10, 256 }
  0x17   : > { %p677_p3 = scmp.ne.s32.totalorder %s888_s10, %s676_s21  ;;  %p678_p5 = pneg %p894_p0 }
  0x18   : > { %s681_s25 = scalar_lea.hbm %s1013_s1, 512  ;;  %p682_p4 = scmp.lt.u32.totalorder %s888_s10, %s1013_s1 }
  0x19   : > { %p679_p6 = pnand %p678_p5, %p677_p3  ;;  %p683_p10 = scmp.lt.u32.totalorder %s681_s25, %s676_s21 }
  0x1a   : > { %p685_p12 = scmp.lt.u32.totalorder %s676_s21, %s888_s10 }
  0x1b   : > { %p680_p7 = pneg %p679_p6  ;;  %p684_p13 = por %p683_p10, %p682_p4 }
  0x1d   : > { %p686_p1 = por %p685_p12, %p684_p13 }
  0x1f   : > { %p687_p2 = pnand %p686_p1, %p680_p7 }
  0x21   : > { %690 = shalt.err (!%p687_p2)
}
  0x22   : > { %s691_s5 = scalar_lea.vmem %s890_s12, 256  ;;  %s790_s7 = smov [#allocation2]  }
  0x23   : > { %p692_p3 = scmp.ne.s32.totalorder %s890_s12, %s691_s5  ;;  %s696_s8 = sshll.u32 %s790_s7, 4  ;;  %s697_s8 = int_to_ptr.vmem [resolvable:$false] %s696_s8 }
  0x24   : > { %s698_s9 = scalar_lea.vmem %s697_s8, 512  ;;  %p699_p9 = scmp.lt.s32.totalorder %s890_s12, %s697_s8 }
  0x25   : > { %p694_p6 = pnand %p692_p3, %p678_p5  ;;  %p700_p4 = scmp.lt.s32.totalorder %s698_s9, %s691_s5 }
  0x27   : > { %p695_p11 = pneg %p694_p6  ;;  %p701_p10 = por %p700_p4, %p699_p9 }
  0x29   : > { %p702_p12 = pnand %p701_p10, %p695_p11 }
  0x2b   : > { %705 = shalt.err (!%p702_p12)
}
  0x2c   : > { %615 = dma.hbm_to_vmem [thread:$0]  (!%p894_p0), %s888_s10, 256, %s890_s12, %s215_s14  }
  0x2d   : > { %p1023_p1 = scmp.lt.s32.totalorder %s788_s20, 3  ;;  %p1024_p2 = scmp.ge.s32.totalorder %s788_s20, 1 }
  0x2f   : > { %p232_p5 = pnand %p1024_p2, %p1023_p1 }
  0x30   : > { %s930_s11 = sand.u32 (!%p232_p5), 1, %s772_s16  }
  0x31   : > { %235 = sbr.rel (%p232_p5) target bundleno = 295 (0x127), region = 36  ;;  %s592_s21 = sshll.u32 (!%p232_p5), %s930_s11, 4 }
  0x32   : > { %s238_s22 = scalar_lea.sflag (!%p232_p5), [#allocation3], %s930_s11  ;;  %s241_s13 = scalar_lea.vmem (!%p232_p5), [#allocation2], %s592_s21 }
  0x38   : > { %759 = dma.done.wait (%p866_p8), %s238_s22, 256  }
  0x39   : > { %761 = vsyncadd (%p866_p8), %s238_s22, 4294967040  ;;  %p285_p9 = scmp.lt.s32.totalorder %s780_s18, 1  ;;  %v791_v0 = vmov 0.0   ;;  %v792_v1 = vmov 0   ;;  %v328_v2 = vld [vmem:[%s241_s13 + $0x8] sm:$0xff]  ;;  %v327_v3 = vld [vmem:[%s241_s13] sm:$0xff] }
  0x3a   : > { %414 = vmatprep.mubr.f32.mxu0 %v791_v0  ;;  %420 = vmatprep.mubr.f32.mxu1 %v791_v0  ;;  %v329_v4 = vld [vmem:[%s1014_s2] sm:$0xff]  ;;  %vm343_vm0 = vcmask 64512   ;;  %v330_v5 = vld [vmem:[%s1014_s2 + $0x8] sm:$0xff]  ;;  %s605_s13 = sshll.u32 %s780_s18, 8  ;;  %p1025_p11 = scmp.ne.s32.totalorder %s1020_s28, 0 }
  0x3b   : > { %s286_s10 = scalar_select %p285_p9, %s780_s18, 1  ;;  %672 = vset.pattern.permute.xlu1 %v792_v1  ;;  %673 = vset.pattern.permute.xlu0 %v792_v1  ;;  %v331_v11 = vld [vmem:[%s1015_s3] sm:$0xff]  ;;  %v332_v13 = vld [vmem:[%s1015_s3 + $0x8] sm:$0xff] }
  0x3c   : > { %350 = vmatprep.subr.mxu0 %v328_v2  ;;  %606 = vmatprep.subr.mxu1 %v328_v2  ;;  %s434_s18 = scalar_lea.sflag [#allocation4], %s930_s11 }
  0x3d   : > { %s604_s12 = sshll.u32 %s286_s10, 4  ;;  %351 = vmatpush1.msra.mxu0 %v327_v3  ;;  %607 = vmatpush1.msra.mxu1 %v327_v3  ;;  %s284_s10 = scalar_lea.vmem [#allocation5], %s592_s21 }
  0x3e   : > { %s293_s25 = scalar_lea.vmem %s1012_s0, %s604_s12  ;;  %596 = vmatmul.mubr.msk.f32.vlgmr.msra.gmra.mrb[0].mxu0 %vm343_vm0, %v329_v4  ;;  %597 = vmatmul.mubr.msk.f32.vlgmr.msra.gmra.mrb[0].mxu1 %vm343_vm0, %v330_v5  ;;  %s450_s12 = sshll.u32 %s284_s10, 4  ;;  %s965_s12 = int_to_ptr.vmem [resolvable:$true] %s450_s12 }
  0x3f   : > { %v306_v6 = vld [vmem:[%s293_s25] sm:$0xff]  ;;  %v307_v7 = vld [vmem:[%s293_s25 + $0x8] sm:$0xff]  ;;  %335 = vperm.xlu1 %672, %v331_v11   ;;  %s963_s25 = scalar_lea.hbm %s1016_s4, %s605_s13  ;;  %s706_s26 = scalar_lea.vmem %s965_s12, 256 }
  0x40   : > { %v308_v8 = vadd.f32 %v307_v7, %v306_v6  ;;  %v311_v9 = vmul.f32 %v306_v6, %v306_v6  ;;  %v312_v10 = vmul.f32 %v307_v7, %v307_v7  ;;  %p707_p8 = scmp.ne.s32.totalorder %s965_s12, %s706_s26  ;;  %s793_s21 = smov [#allocation5]  }
  0x41   : > { %s710_s27 = sshll.u32 %s793_s21, 4  ;;  %s711_s27 = int_to_ptr.vmem [resolvable:$false] %s710_s27 }
  0x42   : > { %309 = vadd.xlane.f32.xlu0 %v308_v8  ;;  %v313_v12 = vadd.f32 %v312_v10, %v311_v9  ;;  %p708_p0 = pnand %p707_p8, %p1025_p11  ;;  %s712_s6 = scalar_lea.vmem %s711_s27, 512 }
  0x43   : > { %340 = vperm.xlu1 %672, %v332_v13   ;;  %p713_p13 = scmp.lt.s32.totalorder %s965_s12, %s711_s27  ;;  %p714_p3 = scmp.lt.s32.totalorder %s712_s6, %s706_s26 }
  0x44   : > { %p709_p7 = pneg %p708_p0 }
  0x45   : > { %p715_p6 = por %p714_p3, %p713_p13 }
  0x46   : > { %314 = vadd.xlane.f32.xlu0 %v313_v12 }
  0x47   : > { %p716_p4 = pnand %p715_p6, %p709_p7 }
  0xbe   : > { %v336_v22 = vpop.permute.xlu1 %335 }
  0xc2   : > { %v341_v26 = vpop.permute.xlu1 %340 }
  0xcf   : > { %v310_v14 = vpop.xlane.xlu0 %309 }
  0xd0   : > { %v316_v15 = vmul.f32 0.00390625, %v310_v14 }
  0xd2   : > { %v318_v17 = vmul.f32 %v316_v15, %v316_v15  ;;  %v321_v23 = vsub.f32 %v306_v6, %v316_v15  ;;  %v322_v25 = vsub.f32 %v307_v7, %v316_v15 }
  0xd3   : > { %v315_v16 = vpop.xlane.xlu0 %314 }
  0xd4   : > { %v317_v18 = vmul.f32 0.00390625, %v315_v16 }
  0xd6   : > { %v319_v19 = vsub.f32 %v317_v18, %v318_v17 }
  0xd8   : > { %v320_v20 = vmax.f32 %v319_v19, 0.0 }
  0xda   : > { %v323_v21 = vadd.f32 1e-05, %v320_v20 }
  0xdc   : > { %674 = vrsqrt.f32 %v323_v21 }
  0xe6   : > { %v675_v24 = vpop.eup %674 }
  0xe7   : > { %v325_v29 = vmul.f32 %v675_v24, %v321_v23  ;;  %v326_v33 = vmul.f32 %v675_v24, %v322_v25 }
 0x111   : > { %v416_v27 = vpop.f32.mrb[0].mxu0  ;;  %v422_v28 = vpop.f32.mrb[0].mxu1 }
 0x112   : > { %v417_v30 = vadd.f32 %v416_v27, %v336_v22  ;;  %v418_v31 = vpop.f32.mrb[1].mxu0  ;;  %v424_v32 = vpop.f32.mrb[1].mxu1  ;;  %v423_v36 = vadd.f32 %v422_v28, %v341_v26 }
 0x113   : > { %v419_v34 = vadd.f32 %v418_v31, %v336_v22  ;;  %v425_v38 = vadd.f32 %v424_v32, %v341_v26 }
 0x114   : > { %v427_v35 = vmul.f32 %v417_v30, %v325_v29 }
 0x115   : > { %v428_v37 = vmul.f32 %v419_v34, %v326_v33 }
 0x116   : > { %v429_v39 = vadd.f32 %v427_v35, %v423_v36 }
 0x117   : > { %v430_v40 = vadd.f32 %v428_v37, %v425_v38 }
 0x118   : > { %431 = vst [vmem:[%s284_s10] sm:$0xff] %v429_v39 }
 0x119   : > { %432 = vst [vmem:[%s284_s10 + $0x8] sm:$0xff] %v430_v40 }
 0x11a   : > { %719 = shalt.err (!%p716_p4)
}
 0x11b   : > { %s720_s11 = scalar_lea.hbm %s963_s25, 256  ;;  %s724_s8 = scalar_lea.hbm %s1016_s4, 512 }
 0x11c   : > { %p721_p10 = scmp.ne.s32.totalorder %s963_s25, %s720_s11  ;;  %p725_p2 = scmp.lt.u32.totalorder %s963_s25, %s1016_s4 }
 0x11d   : > { %p726_p5 = scmp.lt.u32.totalorder %s724_s8, %s720_s11  ;;  %p728_p8 = scmp.lt.u32.totalorder %s720_s11, %s963_s25 }
 0x11e   : > { %p722_p12 = pnand %p721_p10, %p1025_p11 }
 0x11f   : > { %p727_p9 = por %p726_p5, %p725_p2 }
 0x120   : > { %p723_p1 = pneg %p722_p12 }
 0x121   : > { %p729_p0 = por %p728_p8, %p727_p9 }
 0x123   : > { %p730_p7 = pnand %p729_p0, %p723_p1 }
 0x125   : > { %733 = shalt.err (!%p730_p7)
}
 0x126   : > { %610 = dma.vmem_to_hbm [thread:$0]  (%p1025_p11), %s965_s12, 256, %s963_s25, %s434_s18  }
 0x127 PF: > { %s462_s13 = sand.u32 1, %s768_s15   ;;  %p1026_p13 = scmp.ne.s32.totalorder %s1021_s30, 0 }
 0x128   : > { %p1027_p3 = scmp.ge.s32.totalorder %s788_s20, 2  ;;  %s463_s10 = scalar_lea.sflag [#allocation4], %s462_s13 }
 0x12a   : > { %p617_p6 = pnand %p1027_p3, %p1026_p13 }
 0x12c   : > { %763 = dma.done.wait (!%p617_p6), %s463_s10, 256  }
 0x12d   : > { %765 = vsyncadd (!%p617_p6), %s463_s10, 4294967040  ;;  %s20_s20 = sadd.s32 1, %s788_s20   ;;  %s1028_s15 = smov %s772_s16 }
 0x12e   : > { %p17_p4 = scmp.ge.s32.totalorder %s20_s20, 4   ;;  %s1029_s16 = smov %s776_s17 }
 0x12f   : > { %s1030_s17 = smov %s875_s29  ;;  %s1031_s18 = smov %s784_s19 }
 0x130   : > { %s1032_s19 = smov %s1034_s23  ;;  %19 = sbr.rel (!%p17_p4) target bundleno = 6 (0x6), region = 90 }
 0x137   :  { %468 = vsyncpa [#allocation3], 1 }
 0x138   :  { %470 = vsyncpa [#allocation3 + $0x1], 1 }
 0x139   :  { %471 = vsyncpa [#allocation4], 1 }
 0x13a   :  { %473 = vsyncpa [#allocation4 + $0x1], 1 }

</bundles_post_ra>
